<compile_context>
chip_gen: v7x
topology: tpu7x:2x2x1
jax: 0.10.0
libtpu: 0.0.40
codegen_flags: <defaults>
</compile_context>

<pallas_src>
import functools

import jax
import jax.numpy as jnp
from jax.experimental import pallas as pl
from jax.experimental.pallas import tpu as pltpu

MARGIN = 1.0
EPS = 1e-9

# Budget for the per-step VMEM working set: 2 inputs x 2 pipeline buffers in
# native dtype plus ~3 full-tile f32 intermediates (upcasts / diff / squares).
# Kept safe for v5e's 16 MiB scoped default era by raising the limit explicitly
# below; well under physical VMEM on every generation (128/128/64 MiB).
_VMEM_BUDGET = 16 * 1024 * 1024
_VMEM_LIMIT_BYTES = 32 * 1024 * 1024


def _round_up(x, m):
    return ((x + m - 1) // m) * m


def _contrastive_kernel(o1_ref, o2_ref, t_ref, loss_ref, *, margin, eps,
                        batch, block_b):
    # o1_ref/o2_ref: (TB, D) tiles in their native dtype; upcast in-kernel so
    # bf16 activations travel over HBM at half the bytes.
    o1 = o1_ref[...].astype(jnp.float32)
    o2 = o2_ref[...].astype(jnp.float32)
    diff = o2 - o1
    distances = jnp.sum(diff * diff, axis=1, keepdims=True)           # (TB, 1)
    t = t_ref[...].astype(jnp.float32)                                # (TB, 1)
    hinge = jnp.maximum(margin - jnp.sqrt(distances + eps), 0.0)
    per_row = 0.5 * (t * distances + 0.5 * (1.0 - t) * hinge * hinge)

    # Mask rows past the true batch size (ragged last block): the pad contents
    # are unspecified (possibly NaN when reinterpreted as float), so the mask
    # must be applied to the per-row loss BEFORE the block reduction.
    row = (pl.program_id(0) * block_b
           + jax.lax.broadcasted_iota(jnp.int32, per_row.shape, 0))
    masked = jnp.where(row < batch, per_row, 0.0)

    # One partial sum per block -> (1, 1, 1) output tile.
    loss_ref[...] = jnp.sum(masked).reshape(1, 1, 1)


def contrastive_loss(output1, output2, target, *, margin=MARGIN, eps=EPS,
                     size_average=True):
    B, D = output1.shape
    itemsize = jnp.dtype(output1.dtype).itemsize
    # Sublane alignment: 8 rows for 32-bit dtypes, 16 for 16-bit (bf16) packing.
    align = max(8, 32 // max(itemsize, 1))

    # Per-row VMEM bytes: double-buffered native-dtype DMA tiles for both
    # inputs plus ~3 f32 full-width intermediates inside the kernel.
    per_row_bytes = 2 * 2 * D * itemsize + 3 * D * 4
    max_rows = max(_VMEM_BUDGET // per_row_bytes, align)
    max_rows = (max_rows // align) * align

    # At least 2 grid steps whenever B allows it, so the "parallel" grid axis
    # can be split across the two TensorCores on v7x.
    min_blocks = 2 if B > align else 1
    num_blocks = max(pl.cdiv(B, max_rows), min_blocks)
    block_b = _round_up(pl.cdiv(B, num_blocks), align)
    if block_b >= B:
        # Block equal to the full batch dim is always layout-legal.
        block_b = B
        num_blocks = 1
    else:
        num_blocks = pl.cdiv(B, block_b)

    target2d = target.reshape(B, 1).astype(jnp.int32)

    kernel = functools.partial(_contrastive_kernel, margin=margin, eps=eps,
                               batch=B, block_b=block_b)

    partials = pl.pallas_call(
        kernel,
        out_shape=jax.ShapeDtypeStruct((num_blocks, 1, 1), jnp.float32),
        grid_spec=pltpu.PrefetchScalarGridSpec(
            num_scalar_prefetch=0,
            grid=(num_blocks,),
            in_specs=[
                pl.BlockSpec((block_b, D), lambda i: (i, 0)),
                pl.BlockSpec((block_b, D), lambda i: (i, 0)),
                pl.BlockSpec((block_b, 1), lambda i: (i, 0)),
            ],
            out_specs=pl.BlockSpec((1, 1, 1), lambda i: (i, 0, 0)),
        ),
        # Independent per-block partial sums -> parallel axis (2-TC split on
        # v7x, harmless on v5e/v6e).
        compiler_params=pltpu.CompilerParams(
            dimension_semantics=("parallel",),
            vmem_limit_bytes=_VMEM_LIMIT_BYTES),
    )(output1, output2, target2d)

    total = jnp.sum(partials)
    return total / B if size_average else total


def _reference(output1, output2, target, margin=MARGIN, eps=EPS, size_average=True):
    o1 = output1.astype(jnp.float32)
    o2 = output2.astype(jnp.float32)
    distances = jnp.sum((o2 - o1) ** 2, axis=1)
    hinge = jnp.maximum(margin - jnp.sqrt(distances + eps), 0.0)
    t = target.astype(jnp.float32)
    losses = 0.5 * (t * distances + 0.5 * (1.0 - t) * hinge ** 2)
    return jnp.mean(losses) if size_average else jnp.sum(losses)


if __name__ == "__main__":
    # Case 1: aligned batch, f32, size_average=True (mean); B=16 splits into
    # two blocks (exercises the multi-block partial-sum path).
    k1, k2, k3 = jax.random.split(jax.random.PRNGKey(0), 3)
    B, D = 16, 128
    output1 = jax.random.normal(k1, (B, D), dtype=jnp.float32) * 0.5
    output2 = jax.random.normal(k2, (B, D), dtype=jnp.float32) * 0.5
    target = jax.random.bernoulli(k3, 0.5, (B,)).astype(jnp.int32)

    loss = jax.block_until_ready(contrastive_loss(output1, output2, target))
    ref = _reference(output1, output2, target)
    assert jnp.allclose(loss, ref, rtol=1e-5, atol=1e-5), (loss, ref)

    # Case 2: batch not a multiple of the sublane tile (exercises the in-kernel
    # ragged-block mask), size_average=False (sum).
    k4, k5, k6 = jax.random.split(jax.random.PRNGKey(1), 3)
    B2, D2 = 13, 256
    p1 = jax.random.normal(k4, (B2, D2), dtype=jnp.float32)
    p2 = jax.random.normal(k5, (B2, D2), dtype=jnp.float32)
    t2 = jax.random.bernoulli(k6, 0.5, (B2,)).astype(jnp.int32)

    loss2 = jax.block_until_ready(
        contrastive_loss(p1, p2, t2, size_average=False))
    ref2 = _reference(p1, p2, t2, size_average=False)
    assert jnp.allclose(loss2, ref2, rtol=1e-5, atol=1e-5), (loss2, ref2)

    # Case 3: bf16 activations (native-dtype DMA, 16-row sublane alignment,
    # ragged last block).
    k7, k8, k9 = jax.random.split(jax.random.PRNGKey(2), 3)
    B3, D3 = 20, 128
    q1 = jax.random.normal(k7, (B3, D3), dtype=jnp.bfloat16)
    q2 = jax.random.normal(k8, (B3, D3), dtype=jnp.bfloat16)
    t3 = jax.random.bernoulli(k9, 0.5, (B3,)).astype(jnp.int32)

    loss3 = jax.block_until_ready(contrastive_loss(q1, q2, t3))
    ref3 = _reference(q1, q2, t3)
    assert jnp.allclose(loss3, ref3, rtol=1e-4, atol=1e-4), (loss3, ref3)

    print("KERNEL_OK")
</pallas_src>

<mosaic_0001>
module attributes {stable_mosaic.version = 11 : i64} {
  func.func @_contrastive_kernel(%arg0: i32, %arg1: memref<8x128xf32, #tpu.memory_space<vmem>>, %arg2: memref<8x128xf32, #tpu.memory_space<vmem>>, %arg3: memref<8x1xi32, #tpu.memory_space<vmem>>, %arg4: memref<1x1x1xf32, #tpu.memory_space<vmem>>) attributes {dimension_semantics = [#tpu.dimension_semantics<parallel>], iteration_bounds = array<i64: 2>, scalar_prefetch = 0 : i64, scratch_operands = 0 : i64, tpu.core_type = #tpu.core_type<tc>, window_params = [{transform_indices = @transform_0, window_bounds = array<i64: 8, 128>}, {transform_indices = @transform_1, window_bounds = array<i64: 8, 128>}, {transform_indices = @transform_2, window_bounds = array<i64: 8, 1>}, {transform_indices = @transform_3, window_bounds = array<i64: 1, 1, 1>}]} {
    %c0 = arith.constant 0 : index
    %c0_0 = arith.constant 0 : index
    %0 = vector.load %arg1[%c0, %c0_0] : memref<8x128xf32, #tpu.memory_space<vmem>>, vector<8x128xf32>
    %c0_1 = arith.constant 0 : index
    %c0_2 = arith.constant 0 : index
    %1 = vector.load %arg2[%c0_1, %c0_2] : memref<8x128xf32, #tpu.memory_space<vmem>>, vector<8x128xf32>
    %2 = arith.subf %1, %0 : vector<8x128xf32>
    %3 = arith.mulf %2, %2 : vector<8x128xf32>
    %cst = arith.constant dense<0.000000e+00> : vector<8xf32>
    %4 = vector.multi_reduction <add>, %3, %cst [1] : vector<8x128xf32> to vector<8xf32>
    %5 = vector.shape_cast %4 : vector<8xf32> to vector<8x1xf32>
    %c0_3 = arith.constant 0 : index
    %c0_4 = arith.constant 0 : index
    %6 = vector.load %arg3[%c0_3, %c0_4] : memref<8x1xi32, #tpu.memory_space<vmem>>, vector<8x1xi32>
    %7 = arith.sitofp %6 : vector<8x1xi32> to vector<8x1xf32>
    %cst_5 = arith.constant 9.99999971E-10 : f32
    %8 = vector.broadcast %cst_5 : f32 to vector<8x1xf32>
    %9 = arith.addf %5, %8 : vector<8x1xf32>
    %10 = math.sqrt %9 : vector<8x1xf32>
    %cst_6 = arith.constant 1.000000e+00 : f32
    %11 = vector.broadcast %cst_6 : f32 to vector<8x1xf32>
    %12 = arith.subf %11, %10 : vector<8x1xf32>
    %cst_7 = arith.constant 0.000000e+00 : f32
    %13 = vector.broadcast %cst_7 : f32 to vector<8x1xf32>
    %14 = arith.maximumf %12, %13 : vector<8x1xf32>
    %15 = arith.mulf %7, %5 : vector<8x1xf32>
    %cst_8 = arith.constant 1.000000e+00 : f32
    %16 = vector.broadcast %cst_8 : f32 to vector<8x1xf32>
    %17 = arith.subf %16, %7 : vector<8x1xf32>
    %cst_9 = arith.constant 5.000000e-01 : f32
    %18 = vector.broadcast %cst_9 : f32 to vector<8x1xf32>
    %19 = arith.mulf %18, %17 : vector<8x1xf32>
    %20 = arith.mulf %19, %14 : vector<8x1xf32>
    %21 = arith.mulf %20, %14 : vector<8x1xf32>
    %22 = arith.addf %15, %21 : vector<8x1xf32>
    %cst_10 = arith.constant 5.000000e-01 : f32
    %23 = vector.broadcast %cst_10 : f32 to vector<8x1xf32>
    %24 = arith.mulf %23, %22 : vector<8x1xf32>
    %c8_i32 = arith.constant 8 : i32
    %25 = arith.muli %arg0, %c8_i32 : i32
    %26 = tpu.iota {dimensions = array<i32: 0>} : vector<8x1xi32>
    %27 = vector.broadcast %25 : i32 to vector<8x1xi32>
    %28 = arith.addi %27, %26 : vector<8x1xi32>
    %c16_i32 = arith.constant 16 : i32
    %29 = vector.broadcast %c16_i32 : i32 to vector<8x1xi32>
    %30 = arith.cmpi slt, %28, %29 : vector<8x1xi32>
    %cst_11 = arith.constant 0.000000e+00 : f32
    %31 = vector.broadcast %cst_11 : f32 to vector<8x1xf32>
    %32 = arith.select %30, %24, %31 : vector<8x1xi1>, vector<8x1xf32>
    %33 = vector.shape_cast %32 : vector<8x1xf32> to vector<1x8x1xf32>
    %cst_12 = arith.constant dense<0.000000e+00> : vector<1xf32>
    %34 = vector.multi_reduction <add>, %33, %cst_12 [1, 2] : vector<1x8x1xf32> to vector<1xf32>
    %35 = vector.shape_cast %34 : vector<1xf32> to vector<1x1x1xf32>
    %36 = vector.extract %35[0, 0, 0] : f32 from vector<1x1x1xf32>
    %37 = vector.broadcast %36 : f32 to vector<1x1x1xf32>
    %c0_13 = arith.constant 0 : index
    %c0_14 = arith.constant 0 : index
    %c0_15 = arith.constant 0 : index
    %38 = vector.load %arg4[%c0_13, %c0_14, %c0_15] : memref<1x1x1xf32, #tpu.memory_space<vmem>>, vector<1x1x1xf32>
    tpu.vector_store %arg4[%c0_13, %c0_14, %c0_15], %37 {strides = array<i32>} : memref<1x1x1xf32, #tpu.memory_space<vmem>>, vector<1x1x1xf32>,
    return
  }
  func.func @transform_0(%arg0: i32) -> (i32, i32) {
    %c0_i32 = arith.constant 0 : i32
    %c0_i32_0 = arith.constant 0 : i32
    return %arg0, %c0_i32 : i32, i32
  }
  func.func @transform_1(%arg0: i32) -> (i32, i32) {
    %c0_i32 = arith.constant 0 : i32
    %c0_i32_0 = arith.constant 0 : i32
    return %arg0, %c0_i32 : i32, i32
  }
  func.func @transform_2(%arg0: i32) -> (i32, i32) {
    %c0_i32 = arith.constant 0 : i32
    %c0_i32_0 = arith.constant 0 : i32
    return %arg0, %c0_i32 : i32, i32
  }
  func.func @transform_3(%arg0: i32) -> (i32, i32, i32) {
    %c0_i32 = arith.constant 0 : i32
    %c0_i32_0 = arith.constant 0 : i32
    %c0_i32_1 = arith.constant 0 : i32
    return %arg0, %c0_i32, %c0_i32_0 : i32, i32, i32
  }
}

</mosaic_0001>

<bundles_post_ra>
// kernel: tpu_custom_call.1
= control target key start
LH: loop header
LB: loop body
LE: loop exit
PB: predicated region body
PF: predicated region fallthrough
CT: control target
= control target key end

     0   :  { %8 = vsyncpa [#allocation3], 0  ;;  %s607_s0 = inlined_call_operand.vmem [shape: f32[16,128], index: 0, kind: input, shape index: {}]   ;;  %s608_s1 = inlined_call_operand.hbm [shape: f32[16,128], index: 1, kind: input, shape index: {}]   ;;  %s609_s2 = inlined_call_operand.vmem [shape: s32[16,1], index: 2, kind: input, shape index: {}]   ;;  %s610_s3 = inlined_call_operand.vmem [shape: f32[2,1,1], index: 3, kind: output, shape index: {}]  }
   0x1   :  { %10 = vsyncpa [#allocation3 + $0x1], 0  ;;  %s489_s12 = smov 0   ;;  %s491_s13 = smov 0  }
   0x2   :  { %s493_s14 = smov 0   ;;  %s495_s15 = smov 0  }
   0x3 LB: > { %s508_s16 = sadd.s32 4294967295, %s466_s15   ;;  %s511_s17 = sadd.s32 1, %s466_s15   ;;  %s466_s15 = sphi %s495_s15, %s618_s15   ;;  %s462_s14 = sphi %s493_s14, %s617_s14   ;;  %s458_s13 = sphi %s491_s13, %s616_s13   ;;  %s454_s12 = sphi %s489_s12, %s615_s12  }
   0x4   : > { %s46_s18 = ssub.s32 %s466_s15, %s511_s17  ;;  %s49_s19 = sadd.s32 1, %s462_s14 }
   0x5   : > { %p47_p0 = scmp.eq.s32.totalorder %s46_s18, 0  ;;  %p56_p1 = scmp.ne.s32.totalorder %s462_s14, %s458_s13 }
   0x6   : > { %p57_p2 = scmp.eq.s32.totalorder %s466_s15, 0  ;;  %p62_p3 = scmp.ne.s32.totalorder %s458_s13, %s454_s12 }
   0x7   : > { %s521_s20 = scalar_select %p47_p0, %s462_s14, %s49_s19  }
   0x8   : > { %p58_p4 = por %p57_p2, %p56_p1  ;;  %p63_p5 = scmp.eq.s32.totalorder %s508_s16, 0 }
   0x9   : > { %p367_p6 = scmp.lt.s32.totalorder %s466_s15, 2  ;;  %s145_s22 = sand.u32 1, %s462_s14  }
   0xa   : > { %p525_p7 = por %p63_p5, %p62_p3  ;;  %s350_s23 = sshll.u32 %s145_s22, 3 }
   0xb   : > { %s351_s24 = sshll.u32 %s466_s15, 7  ;;  %s149_s28 = scalar_lea.vmem [#allocation2], %s350_s23 }
   0xc   : > { %s534_s27 = scalar_lea.hbm %s608_s1, %s351_s24  ;;  %s156_s29 = sshll.u32 %s149_s28, 4  ;;  %s536_s29 = int_to_ptr.vmem [resolvable:$true] %s156_s29 }
   0xd   : > { %p538_p8 = pnand %p367_p6, %p58_p4  ;;  %s146_s4 = scalar_lea.sflag [#allocation3], %s145_s22 }
   0xe   : > { %s402_s5 = scalar_lea.hbm %s534_s27, 128  ;;  %s407_s8 = scalar_lea.hbm %s608_s1, 256 }
   0xf   : > { %p403_p11 = scmp.ne.s32.totalorder %s534_s27, %s402_s5  ;;  %p404_p12 = pneg %p538_p8 }
  0x10   : > { %p408_p1 = scmp.lt.u32.totalorder %s534_s27, %s608_s1  ;;  %p409_p2 = scmp.lt.u32.totalorder %s407_s8, %s402_s5 }
  0x11   : > { %p405_p13 = pnand %p404_p12, %p403_p11  ;;  %p411_p4 = scmp.lt.u32.totalorder %s402_s5, %s534_s27 }
  0x12   : > { %p410_p3 = por %p409_p2, %p408_p1 }
  0x13   : > { %p406_p0 = pneg %p405_p13 }
  0x14   : > { %p412_p5 = por %p411_p4, %p410_p3 }
  0x16   : > { %p413_p6 = pnand %p412_p5, %p406_p0 }
  0x18   : > { %416 = shalt.err (!%p413_p6)
}
  0x19   : > { %s417_s11 = scalar_lea.vmem %s536_s29, 128  ;;  %s468_s12 = smov [#allocation2]  }
  0x1a   : > { %p418_p11 = scmp.ne.s32.totalorder %s536_s29, %s417_s11  ;;  %s422_s18 = sshll.u32 %s468_s12, 4  ;;  %s423_s18 = int_to_ptr.vmem [resolvable:$false] %s422_s18 }
  0x1b   : > { %s424_s19 = scalar_lea.vmem %s423_s18, 256  ;;  %p425_p10 = scmp.lt.s32.totalorder %s536_s29, %s423_s18 }
  0x1c   : > { %p420_p13 = pnand %p418_p11, %p404_p12  ;;  %p426_p1 = scmp.lt.s32.totalorder %s424_s19, %s417_s11 }
  0x1e   : > { %p421_p9 = pneg %p420_p13  ;;  %p427_p2 = por %p426_p1, %p425_p10 }
  0x20   : > { %p428_p3 = pnand %p427_p2, %p421_p9 }
  0x22   : > { %431 = shalt.err (!%p428_p3)
}
  0x23   : > { %366 = dma.hbm_to_vmem [thread:$0]  (!%p538_p8), %s534_s27, 128, %s536_s29, %s146_s4  }
  0x24   : > { %p613_p0 = scmp.lt.s32.totalorder %s466_s15, 3  ;;  %p614_p4 = scmp.ge.s32.totalorder %s466_s15, 1 }
  0x26   : > { %p169_p12 = pnand %p614_p4, %p613_p0 }
  0x27   : > { %s174_s22 = sand.u32 (!%p169_p12), 1, %s458_s13  }
  0x28   : > { %172 = sbr.rel (%p169_p12) target bundleno = 438 (0x1b6), region = 32  ;;  %s353_s23 = sshll.u32 (!%p169_p12), %s174_s22, 3 }
  0x29   : > { %s175_s24 = scalar_lea.sflag (!%p169_p12), [#allocation3], %s174_s22  ;;  %s178_s25 = scalar_lea.vmem (!%p169_p12), [#allocation2], %s353_s23 }
  0x2f   : > { %449 = dma.done.wait (%p525_p7), %s175_s24, 128  }
  0x30   : > { %451 = vsyncadd (%p525_p7), %s175_s24, 4294967168  ;;  %p207_p9 = scmp.lt.s32.totalorder %s508_s16, 1  ;;  %v219_v1 = vld [vmem:[%s178_s25] sm:$0xff]  ;;  %v244_v12 = vlaneseq  ;;  %s356_s5 = sshll.u32 %s508_s16, 3  ;;  %vm250_vm3 = vcmask 7168   ;;  %vm262_vm4 = vcmask 0  }
  0x31   : > { %v246_v19 = vstv %s356_s5 }
  0x32   : > { %s580_s26 = scalar_select %p207_p9, %s508_s16, 1  ;;  %v245_v17 = vshrl.u32 %v244_v12, 7 }
  0x34   : > { %s354_s15 = sshll.u32 %s580_s26, 3  ;;  %v247_v21 = vadd.s32 %v246_v19, %v245_v17  ;;  %s217_s7 = scalar_lea.vmem %s610_s3, %s580_s26 }
  0x35   : > { %s210_s29 = scalar_lea.vmem %s607_s0, %s354_s15  ;;  %s214_s4 = scalar_lea.vmem %s609_s2, %s354_s15 }
  0x36   : > { %v218_v0 = vld [vmem:[%s210_s29] sm:$0xff]  ;;  %vm248_vm2 = vcmp.lt.s32.totalorder %v247_v21, 16 }
  0x37   : > { %v220_v2 = vsub.f32 %v219_v1, %v218_v0  ;;  %v224_v6 = vld [vmem:[%s214_s4] sm:$0xff] }
  0x38   : > { %v225_v7 = vcvt.s32.f32 %v224_v6 }
  0x39   : > { %v221_v3 = vmul.f32 %v220_v2, %v220_v2 }
  0x3a   : > { %v237_v9 = vsub.f32 1.0, %v225_v7 }
  0x3b   : > { %222 = vadd.xlane.f32.xlu0 %v221_v3 }
  0x3c   : > { %v238_v15 = vmul.f32 0.5, %v237_v9 }
  0xc8   : > { %v223_v4 = vpop.xlane.xlu0 %222 }
  0xc9   : > { %v226_v5 = vadd.f32 1e-09, %v223_v4  ;;  %v236_v22 = vmul.f32 %v225_v7, %v223_v4 }
  0xcb   : > { %400 = vrsqrt.f32 %v226_v5  ;;  %vm229_vm0 = vcmp.eq.f32.partialorder %v226_v5, inf  ;;  %v232_v11 = vand.u32 2147483648, %v226_v5  ;;  %vm231_vm1 = vcmp.eq.f32.partialorder %v226_v5, 0.0 }
  0xd5   : > { %v401_v8 = vpop.eup %400 }
  0xd6   : > { %v228_v10 = vmul.f32 %v401_v8, %v226_v5 }
  0xd8   : > { %v230_v13 = vsel %vm229_vm0, %v226_v5, %v228_v10 }
  0xd9   : > { %v233_v14 = vsel %vm231_vm1, %v232_v11, %v230_v13 }
  0xda   : > { %v234_v16 = vsub.f32 1.0, %v233_v14 }
  0xdc   : > { %v235_v18 = vmax.f32 %v234_v16, 0.0 }
  0xde   : > { %v239_v20 = vmul.f32 %v238_v15, %v235_v18 }
  0xe0   : > { %v240_v23 = vmul.f32 %v239_v20, %v235_v18 }
  0xe2   : > { %v241_v24 = vadd.f32 %v240_v23, %v236_v22 }
  0xe4   : > { %v242_v25 = vmul.f32 0.5, %v241_v24 }
  0xe6   : > { %v249_v26 = vsel %vm248_vm2, %v242_v25, 0.0 }
  0xe7   : > { %v251_v27 = vsel %vm250_vm3, %v249_v26, 0.0 }
  0xe8   : > { %252 = vadd.xlane.f32.xlu0 %v251_v27 }
 0x175   : > { %v253_v28 = vpop.xlane.xlu0 %252 }
 0x176   : > { %v254_v29 = vrot.slane %v253_v28, 4 }
 0x178   : > { %v255_v30 = vadd.f32 %v254_v29, %v253_v28 }
 0x17a   : > { %v256_v31 = vrot.slane %v255_v30, 2 }
 0x17c   : > { %v257_v32 = vadd.f32 %v256_v31, %v255_v30 }
 0x17e   : > { %v258_v33 = vrot.slane %v257_v32, 1 }
 0x180   : > { %v259_v34 = vadd.f32 %v258_v33, %v257_v32 }
 0x182   : > { %359 = vpush %v259_v34 }
 0x1b3   : > { %s360_s8 = spop %359 }
 0x1b4   : > { %v261_v35 = vstv %s360_s8 }
 0x1b5   : > { %263 = vst.msk [vmem:[%s217_s7] sm:$0x1] %vm262_vm4, %v261_v35 }
 0x1b6 PF: > { %p13_p7 = scmp.ge.s32.totalorder %s511_s17, 4   ;;  %s615_s12 = smov %s458_s13 }
 0x1b7   : > { %s616_s13 = smov %s462_s14  ;;  %s617_s14 = smov %s521_s20 }
 0x1b8   : > { %s618_s15 = smov %s511_s17  ;;  %15 = sbr.rel (!%p13_p7) target bundleno = 3 (0x3), region = 78 }
 0x1bf   :  { %281 = vsyncpa [#allocation3], 1 }
 0x1c0   :  { %283 = vsyncpa [#allocation3 + $0x1], 1 }

</bundles_post_ra>
